<compile_context>
chip_gen: v7x
topology: tpu7x:2x2x1
jax: 0.10.0
libtpu: 0.0.40
codegen_flags: <defaults>
</compile_context>

<pallas_src>
import functools

import jax
import jax.numpy as jnp
from jax.experimental import pallas as pl
from jax.experimental.pallas import tpu as pltpu


# --------------------------------------------------------------------------- #
# Kernel
# --------------------------------------------------------------------------- #
def _bmm_lane_kernel(a_ref, b_ref, o_ref, *, m_dim, k_dim, f_dim):
    """Per-lane batched matmul.

    a_ref: (M*K, PT)  row m*K + k  holds coeff[:, m, k] for the PT lanes
    b_ref: (K*F, PT)  row k*F + f  holds disp[:, k, f]
    o_ref: (M*F, PT)  row m*F + f  gets  sum_k coeff[:,m,k] * disp[:,k,f]
    """
    a = a_ref[...]  # (M*K, PT)
    b = b_ref[...]  # (K*F, PT)
    for m in range(m_dim):
        # (1, PT) * (F, PT) broadcast-FMA chain on the VPU, unrolled over k.
        acc = a[m * k_dim : m * k_dim + 1, :] * b[0:f_dim, :]
        for k in range(1, k_dim):
            acc = acc + (
                a[m * k_dim + k : m * k_dim + k + 1, :]
                * b[k * f_dim : (k + 1) * f_dim, :]
            )
        o_ref[m * f_dim : (m + 1) * f_dim, :] = acc.astype(o_ref.dtype)


# --------------------------------------------------------------------------- #
# Tiling / layout helpers
# --------------------------------------------------------------------------- #
def _select_point_tile(p_pad, point_tile):
    """Pick a lane-tile: big (bandwidth-bound op), multiple of 128, and at
    least 2 grid steps when possible so both v7x TensorCores get work."""
    pt = min(point_tile, p_pad)
    if p_pad > 128:
        half = 128 * pl.cdiv(p_pad // 2, 128)
        pt = min(pt, half)
    pt = max(128, (pt // 128) * 128)
    return pt


def _relayout_inputs(coefficients, displacements):
    """(P,M,K),(P,K,F) -> lane-dense flattened (M*K,Ppad),(K*F,Ppad).

    Done ONCE at module init (not per forward call); padded lanes are zero.
    """
    p, m_dim, k_dim = coefficients.shape
    _, _, f_dim = displacements.shape
    p_pad = 128 * pl.cdiv(p, 128)
    a = jnp.transpose(coefficients, (1, 2, 0)).reshape(m_dim * k_dim, p)
    b = jnp.transpose(displacements, (1, 2, 0)).reshape(k_dim * f_dim, p)
    if p_pad != p:
        pad = p_pad - p
        a = jnp.pad(a, ((0, 0), (0, pad)))
        b = jnp.pad(b, ((0, 0), (0, pad)))
    return a, b, p_pad


def _parallel_bmm_lane_dense(a2d, b2d, m_dim, k_dim, f_dim, *, point_tile=32768):
    """Run the Pallas kernel on pre-laid-out inputs. Returns (M*F, Ppad)."""
    mk, p_pad = a2d.shape
    assert mk == m_dim * k_dim
    assert b2d.shape == (k_dim * f_dim, p_pad)
    assert p_pad % 128 == 0

    pt = _select_point_tile(p_pad, point_tile)
    grid = (pl.cdiv(p_pad, pt),)

    itemsize = jnp.dtype(a2d.dtype).itemsize
    cost = pl.CostEstimate(
        flops=2 * p_pad * m_dim * k_dim * f_dim,
        transcendentals=0,
        bytes_accessed=int(
            itemsize * p_pad * (m_dim * k_dim + k_dim * f_dim + m_dim * f_dim)
        ),
    )

    kernel = functools.partial(
        _bmm_lane_kernel, m_dim=m_dim, k_dim=k_dim, f_dim=f_dim
    )

    return pl.pallas_call(
        kernel,
        out_shape=jax.ShapeDtypeStruct((m_dim * f_dim, p_pad), a2d.dtype),
        grid_spec=pltpu.PrefetchScalarGridSpec(
            num_scalar_prefetch=0,
            grid=grid,
            in_specs=[
                pl.BlockSpec((m_dim * k_dim, pt), lambda p: (0, p)),
                pl.BlockSpec((k_dim * f_dim, pt), lambda p: (0, p)),
            ],
            out_specs=pl.BlockSpec((m_dim * f_dim, pt), lambda p: (0, p)),
        ),
        compiler_params=pltpu.CompilerParams(
            dimension_semantics=("parallel",),
        ),
        cost_estimate=cost,
    )(a2d, b2d)


def parallel_linear_forward(
    coefficients,
    displacements,
    *,
    point_tile=32768,
    min_pallas_points=1024,
    use_pallas=None,
):
    """torch.bmm semantics: (P, M, K) @ (P, K, F) -> (P, M, F).

    Convenience entry point for raw (un-laid-out) inputs.  The ParallelLinear
    module below hoists the relayout/padding out of the per-call path.
    """
    p, m_dim, k_dim = coefficients.shape
    p2, k2, f_dim = displacements.shape
    assert p == p2 and k_dim == k2

    if use_pallas is None:
        use_pallas = p >= min_pallas_points
    if not use_pallas:
        # Small-P fallback: fixed pallas_call overhead dwarfs the work.
        return jnp.einsum("pmk,pkf->pmf", coefficients, displacements)

    a2d, b2d, _ = _relayout_inputs(coefficients, displacements)
    out2d = _parallel_bmm_lane_dense(
        a2d, b2d, m_dim, k_dim, f_dim, point_tile=point_tile
    )
    out = out2d[:, :p].reshape(m_dim, f_dim, p)
    return jnp.transpose(out, (2, 0, 1))


# --------------------------------------------------------------------------- #
# Module mirror
# --------------------------------------------------------------------------- #
class ParallelLinear:
    """JAX mirror of the PyTorch module.

    Input relayout/padding is done once at init: `coefficients` is a fixed
    buffer and `displacements` is a parameter whose storage layout we control,
    so the per-forward path does no input transposes or pads.
    """

    def __init__(
        self,
        coefficients,
        num_frames,
        key,
        *,
        point_tile=32768,
        min_pallas_points=1024,
    ):
        self.num_points, self.m_rows, self.k_dim = coefficients.shape
        self.num_frames = num_frames
        self.point_tile = point_tile
        self.min_pallas_points = min_pallas_points

        # Reference-layout views (buffer + parameter init mirrors torch.randn).
        self.coefficients = coefficients
        self.displacements = jax.random.normal(
            key, (self.num_points, self.k_dim, num_frames), dtype=jnp.float32
        )

        # Hoisted, lane-dense, 128-padded storage used by the kernel.
        self._a2d, self._b2d, self._p_pad = _relayout_inputs(
            self.coefficients, self.displacements
        )

    def forward(self, lane_dense=False):
        p, m_dim, k_dim, f_dim = (
            self.num_points,
            self.m_rows,
            self.k_dim,
            self.num_frames,
        )

        if p < self.min_pallas_points:
            out = jnp.einsum("pmk,pkf->pmf", self.coefficients, self.displacements)
            return jnp.transpose(out, (1, 2, 0)) if lane_dense else out

        out2d = _parallel_bmm_lane_dense(
            self._a2d, self._b2d, m_dim, k_dim, f_dim, point_tile=self.point_tile
        )
        out = out2d[:, :p].reshape(m_dim, f_dim, p)  # lane-dense (M, F, P)
        if lane_dense:
            return out
        # torch.bmm-compatible layout (extra HBM pass; skip via lane_dense=True).
        return jnp.transpose(out, (2, 0, 1))


# --------------------------------------------------------------------------- #
# Self-test
# --------------------------------------------------------------------------- #
if __name__ == "__main__":
    key = jax.random.PRNGKey(0)
    k_coef_s, k_disp_s, k_coef_l, k_disp_l = jax.random.split(key, 4)

    m_rows = 2      # M (rows of each coefficient matrix, e.g. flow x/y)
    num_frames = 8  # F

    # --- Small shape (P=16): exercises the forced-Pallas partial-lane path. ---
    p_small = 16
    coef_s = jax.random.normal(k_coef_s, (p_small, m_rows, 3), dtype=jnp.float32)
    disp_s = jax.random.normal(k_disp_s, (p_small, 3, num_frames), dtype=jnp.float32)
    out_s = parallel_linear_forward(coef_s, disp_s, use_pallas=True)
    out_s = jax.block_until_ready(out_s)
    ref_s = jnp.einsum("pmk,pkf->pmf", coef_s, disp_s)
    assert out_s.shape == (p_small, m_rows, num_frames)
    assert jnp.allclose(out_s, ref_s, atol=1e-5, rtol=1e-5)

    # --- Module path (P=4096): hoisted relayout, 2-step parallel grid. ---
    p_big = 4096
    coef_l = jax.random.normal(k_coef_l, (p_big, m_rows, 3), dtype=jnp.float32)
    model = ParallelLinear(coef_l, num_frames, k_disp_l)

    flows = jax.block_until_ready(model.forward())                 # (P, M, F)
    flows_ld = jax.block_until_ready(model.forward(lane_dense=True))  # (M, F, P)

    ref = jnp.einsum("pmk,pkf->pmf", coef_l, model.displacements)
    assert flows.shape == (p_big, m_rows, num_frames)
    assert jnp.allclose(flows, ref, atol=1e-5, rtol=1e-5)
    assert flows_ld.shape == (m_rows, num_frames, p_big)
    assert jnp.allclose(jnp.transpose(flows_ld, (2, 0, 1)), ref, atol=1e-5, rtol=1e-5)

    print("KERNEL_OK")
</pallas_src>

<mosaic_0001>
module attributes {stable_mosaic.version = 11 : i64} {
  func.func @_bmm_lane_kernel(%arg0: i32, %arg1: memref<6x128xf32, #tpu.memory_space<vmem>>, %arg2: memref<24x128xf32, #tpu.memory_space<vmem>>, %arg3: memref<16x128xf32, #tpu.memory_space<vmem>>) attributes {dimension_semantics = [#tpu.dimension_semantics<parallel>], iteration_bounds = array<i64: 1>, scalar_prefetch = 0 : i64, scratch_operands = 0 : i64, tpu.core_type = #tpu.core_type<tc>, window_params = [{transform_indices = @transform_0, window_bounds = array<i64: 6, 128>}, {transform_indices = @transform_1, window_bounds = array<i64: 24, 128>}, {transform_indices = @transform_2, window_bounds = array<i64: 16, 128>}]} {
    %c0 = arith.constant 0 : index
    %c0_0 = arith.constant 0 : index
    %0 = vector.load %arg1[%c0, %c0_0] : memref<6x128xf32, #tpu.memory_space<vmem>>, vector<6x128xf32>
    %c0_1 = arith.constant 0 : index
    %c0_2 = arith.constant 0 : index
    %1 = vector.load %arg2[%c0_1, %c0_2] : memref<24x128xf32, #tpu.memory_space<vmem>>, vector<24x128xf32>
    %2 = vector.extract_strided_slice %0 {offsets = [0, 0], sizes = [1, 128], strides = [1, 1]} : vector<6x128xf32> to vector<1x128xf32>
    %3 = vector.extract_strided_slice %1 {offsets = [0, 0], sizes = [8, 128], strides = [1, 1]} : vector<24x128xf32> to vector<8x128xf32>
    %4 = vector.broadcast %2 : vector<1x128xf32> to vector<8x128xf32>
    %5 = arith.mulf %4, %3 : vector<8x128xf32>
    %6 = vector.extract_strided_slice %0 {offsets = [1, 0], sizes = [1, 128], strides = [1, 1]} : vector<6x128xf32> to vector<1x128xf32>
    %7 = vector.extract_strided_slice %1 {offsets = [8, 0], sizes = [8, 128], strides = [1, 1]} : vector<24x128xf32> to vector<8x128xf32>
    %8 = vector.broadcast %6 : vector<1x128xf32> to vector<8x128xf32>
    %9 = arith.mulf %8, %7 : vector<8x128xf32>
    %10 = arith.addf %5, %9 : vector<8x128xf32>
    %11 = vector.extract_strided_slice %0 {offsets = [2, 0], sizes = [1, 128], strides = [1, 1]} : vector<6x128xf32> to vector<1x128xf32>
    %12 = vector.extract_strided_slice %1 {offsets = [16, 0], sizes = [8, 128], strides = [1, 1]} : vector<24x128xf32> to vector<8x128xf32>
    %13 = vector.broadcast %11 : vector<1x128xf32> to vector<8x128xf32>
    %14 = arith.mulf %13, %12 : vector<8x128xf32>
    %15 = arith.addf %10, %14 : vector<8x128xf32>
    %c0_3 = arith.constant 0 : index
    %c0_4 = arith.constant 0 : index
    %16 = vector.load %arg3[%c0_3, %c0_4] : memref<16x128xf32, #tpu.memory_space<vmem>>, vector<8x128xf32>
    tpu.vector_store %arg3[%c0_3, %c0_4], %15 {strides = array<i32>} : memref<16x128xf32, #tpu.memory_space<vmem>>, vector<8x128xf32>,
    %17 = vector.extract_strided_slice %0 {offsets = [3, 0], sizes = [1, 128], strides = [1, 1]} : vector<6x128xf32> to vector<1x128xf32>
    %18 = vector.extract_strided_slice %1 {offsets = [0, 0], sizes = [8, 128], strides = [1, 1]} : vector<24x128xf32> to vector<8x128xf32>
    %19 = vector.broadcast %17 : vector<1x128xf32> to vector<8x128xf32>
    %20 = arith.mulf %19, %18 : vector<8x128xf32>
    %21 = vector.extract_strided_slice %0 {offsets = [4, 0], sizes = [1, 128], strides = [1, 1]} : vector<6x128xf32> to vector<1x128xf32>
    %22 = vector.extract_strided_slice %1 {offsets = [8, 0], sizes = [8, 128], strides = [1, 1]} : vector<24x128xf32> to vector<8x128xf32>
    %23 = vector.broadcast %21 : vector<1x128xf32> to vector<8x128xf32>
    %24 = arith.mulf %23, %22 : vector<8x128xf32>
    %25 = arith.addf %20, %24 : vector<8x128xf32>
    %26 = vector.extract_strided_slice %0 {offsets = [5, 0], sizes = [1, 128], strides = [1, 1]} : vector<6x128xf32> to vector<1x128xf32>
    %27 = vector.extract_strided_slice %1 {offsets = [16, 0], sizes = [8, 128], strides = [1, 1]} : vector<24x128xf32> to vector<8x128xf32>
    %28 = vector.broadcast %26 : vector<1x128xf32> to vector<8x128xf32>
    %29 = arith.mulf %28, %27 : vector<8x128xf32>
    %30 = arith.addf %25, %29 : vector<8x128xf32>
    %c8 = arith.constant 8 : index
    %c0_5 = arith.constant 0 : index
    %31 = vector.load %arg3[%c8, %c0_5] : memref<16x128xf32, #tpu.memory_space<vmem>>, vector<8x128xf32>
    tpu.vector_store %arg3[%c8, %c0_5], %30 {strides = array<i32>} : memref<16x128xf32, #tpu.memory_space<vmem>>, vector<8x128xf32>,
    return
  }
  func.func @transform_0(%arg0: i32) -> (i32, i32) {
    %c0_i32 = arith.constant 0 : i32
    %c0_i32_0 = arith.constant 0 : i32
    return %c0_i32, %arg0 : i32, i32
  }
  func.func @transform_1(%arg0: i32) -> (i32, i32) {
    %c0_i32 = arith.constant 0 : i32
    %c0_i32_0 = arith.constant 0 : i32
    return %c0_i32, %arg0 : i32, i32
  }
  func.func @transform_2(%arg0: i32) -> (i32, i32) {
    %c0_i32 = arith.constant 0 : i32
    %c0_i32_0 = arith.constant 0 : i32
    return %c0_i32, %arg0 : i32, i32
  }
}

</mosaic_0001>

<bundles_post_ra>
// kernel: tpu_custom_call.1
= control target key start
LH: loop header
LB: loop body
LE: loop exit
PB: predicated region body
PF: predicated region fallthrough
CT: control target
= control target key end

     0   :  { %7 = vsyncpa [#allocation3], 0  ;;  %s242_s0 = inlined_call_operand.hbm [shape: f32[6,128], index: 0, kind: input, shape index: {}]   ;;  %s243_s1 = inlined_call_operand.hbm [shape: f32[24,128], index: 1, kind: input, shape index: {}]   ;;  %s244_s2 = inlined_call_operand.hbm [shape: f32[16,128], index: 2, kind: output, shape index: {}]  }
   0x1   :  { %8 = vsyncpa [#allocation6], 0 }
   0x2   :  { %9 = vsyncpa [#allocation4], 0  ;;  %s173_s9 = smov [#allocation2]   ;;  %s174_s11 = smov [#allocation5]  }
   0x3   :  { %s16_s10 = sshll.u32 %s173_s9, 4  ;;  %s25_s12 = sshll.u32 %s174_s11, 4  ;;  %s17_s10 = int_to_ptr.vmem [resolvable:$true] %s16_s10  ;;  %s193_s12 = int_to_ptr.vmem [resolvable:$true] %s25_s12 }
   0x4   :  { %s101_s15 = scalar_lea.hbm %s242_s0, 128 }
   0x5   :  { %p102_p0 = scmp.ne.s32.totalorder %s242_s0, %s101_s15  ;;  %p105_p1 = scmp.lt.u32.totalorder %s101_s15, %s242_s0 }
   0x7   :  { %p107_p2 = pnand %p105_p1, %p102_p0 }
   0x9   :  { %110 = shalt.err (!%p107_p2)
}
   0xa   :  { %s111_s20 = scalar_lea.vmem %s17_s10, 128  ;;  %p116_p4 = scmp.lt.s32.totalorder %s17_s10, %s17_s10 }
   0xb   :  { %p112_p3 = scmp.ne.s32.totalorder %s17_s10, %s111_s20  ;;  %p117_p5 = scmp.lt.s32.totalorder %s111_s20, %s111_s20 }
   0xd   :  { %p118_p6 = por %p117_p5, %p116_p4 }
   0xf   :  { %p119_p7 = pnand %p118_p6, %p112_p3 }
  0x11   :  { %122 = shalt.err (!%p119_p7)
}
  0x12   :  { %19 = dma.hbm_to_vmem [thread:$0]  %s242_s0, 128, %s17_s10, [#allocation3]  }
  0x13   :  { %s123_s25 = scalar_lea.hbm %s243_s1, 384 }
  0x14   :  { %p124_p8 = scmp.ne.s32.totalorder %s243_s1, %s123_s25  ;;  %p127_p9 = scmp.lt.u32.totalorder %s123_s25, %s243_s1 }
  0x16   :  { %p129_p10 = pnand %p127_p9, %p124_p8 }
  0x18   :  { %132 = shalt.err (!%p129_p10)
}
  0x19   :  { %s133_s30 = scalar_lea.vmem %s193_s12, 384  ;;  %p138_p12 = scmp.lt.s32.totalorder %s193_s12, %s193_s12 }
  0x1a   :  { %p134_p11 = scmp.ne.s32.totalorder %s193_s12, %s133_s30  ;;  %p139_p13 = scmp.lt.s32.totalorder %s133_s30, %s133_s30 }
  0x1c   :  { %p140_p0 = por %p139_p13, %p138_p12 }
  0x1e   :  { %p141_p1 = pnand %p140_p0, %p134_p11 }
  0x20   :  { %144 = shalt.err (!%p141_p1)
}
  0x21   :  { %s175_s0 = smov 128   ;;  %s176_s3 = smov 8  }
  0x22   :  { %31 = dma.hbm_to_vmem [thread:$0]  %s243_s1, 384, %s193_s12, [#allocation6], %s175_s0, %s175_s0, %s176_s3  }
  0x23   :  { %167 = dma.done.wait [#allocation3], 128  }
  0x24   :  { %168 = vsyncadd [#allocation3], 4294967168 }
  0x25   :  { %169 = dma.done.wait [#allocation6], 384  }
  0x26   :  { %170 = vsyncadd [#allocation6], 4294966912  ;;  %v42_v0 = vlaneseq  ;;  %v38_v8 = vld [vmem:[#allocation2] sm:$0x3f]  ;;  %v39_v9 = vld [vmem:[#allocation5] sm:$0xff]  ;;  %s177_s1 = smov [#allocation7]  }
  0x27   :  { %v40_v10 = vld [vmem:[#allocation5 + $0x8] sm:$0xff]  ;;  %v41_v11 = vld [vmem:[#allocation5 + $0x10] sm:$0xff]  ;;  %s83_s6 = sshll.u32 %s177_s1, 4  ;;  %s84_s6 = int_to_ptr.vmem [resolvable:$true] %s83_s6 }
  0x28   :  { %v43_v1 = vshrl.u32 %v42_v0, 7  ;;  %s145_s7 = scalar_lea.vmem %s84_s6, 256  ;;  %p150_p3 = scmp.lt.s32.totalorder %s84_s6, %s84_s6 }
  0x29   :  { %p146_p2 = scmp.ne.s32.totalorder %s84_s6, %s145_s7  ;;  %p151_p4 = scmp.lt.s32.totalorder %s145_s7, %s145_s7 }
  0x2a   :  { %v44_v2 = vsub.s32 0, %v43_v1  ;;  %v49_v3 = vsub.s32 1, %v43_v1  ;;  %v55_v4 = vsub.s32 2, %v43_v1  ;;  %v62_v5 = vsub.s32 3, %v43_v1 }
  0x2b   :  { %v67_v6 = vsub.s32 4, %v43_v1  ;;  %v73_v7 = vsub.s32 5, %v43_v1  ;;  %p152_p5 = por %p151_p4, %p150_p3 }
  0x2c   :  { %v45_v12 = vrot.slane %v38_v8, %v44_v2  ;;  %v50_v13 = vrot.slane %v38_v8, %v49_v3  ;;  %v56_v14 = vrot.slane %v38_v8, %v55_v4  ;;  %v63_v15 = vrot.slane %v38_v8, %v62_v5 }
  0x2d   :  { %v68_v16 = vrot.slane %v38_v8, %v67_v6  ;;  %v74_v17 = vrot.slane %v38_v8, %v73_v7  ;;  %p153_p6 = pnand %p152_p5, %p146_p2 }
  0x2e   :  { %v46_v18 = vmul.f32 %v45_v12, %v39_v9  ;;  %v51_v19 = vmul.f32 %v50_v13, %v40_v10  ;;  %v57_v20 = vmul.f32 %v56_v14, %v41_v11  ;;  %v64_v21 = vmul.f32 %v63_v15, %v39_v9 }
  0x2f   :  { %v69_v22 = vmul.f32 %v68_v16, %v40_v10  ;;  %v75_v23 = vmul.f32 %v74_v17, %v41_v11 }
  0x30   :  { %v52_v24 = vadd.f32 %v51_v19, %v46_v18 }
  0x31   :  { %v70_v25 = vadd.f32 %v69_v22, %v64_v21 }
  0x32   :  { %v58_v26 = vadd.f32 %v57_v20, %v52_v24 }
  0x33   :  { %v76_v27 = vadd.f32 %v75_v23, %v70_v25 }
  0x34   :  { %59 = vst [vmem:[#allocation7] sm:$0xff] %v58_v26 }
  0x35   :  { %77 = vst [vmem:[#allocation7 + $0x8] sm:$0xff] %v76_v27 }
  0x36   :  { %156 = shalt.err (!%p153_p6)
}
  0x37   :  { %s157_s10 = scalar_lea.hbm %s244_s2, 256 }
  0x38   :  { %p158_p7 = scmp.ne.s32.totalorder %s244_s2, %s157_s10  ;;  %p161_p8 = scmp.lt.u32.totalorder %s157_s10, %s244_s2 }
  0x3a   :  { %p163_p9 = pnand %p161_p8, %p158_p7 }
  0x3c   :  { %166 = shalt.err (!%p163_p9)
}
  0x3d   :  { %89 = dma.vmem_to_hbm [thread:$0]  %s84_s6, 256, %s244_s2, [#allocation4], %s175_s0, %s175_s0, %s176_s3  }
  0x3e   :  { %171 = dma.done.wait [#allocation4], 256  }
  0x3f   :  { %172 = vsyncadd [#allocation4], 4294967040 }
  0x40   :  { %93 = vsyncpa [#allocation3], 1 }
  0x41   :  { %94 = vsyncpa [#allocation6], 1 }
  0x42   :  { %95 = vsyncpa [#allocation4], 1 }

</bundles_post_ra>
